<compile_context>
chip_gen: v6e
topology: v6e:2x2x1
jax: 0.10.0
libtpu: 0.0.40
codegen_flags: <defaults>
</compile_context>

<pallas_src>
import jax
import jax.numpy as jnp
from jax import lax
from jax.experimental import pallas as pl
from jax.experimental.pallas import tpu as pltpu


# ---------------- Pallas kernels ----------------

def conv_pool_kernel(p_ref, w_ref, b_ref, o_ref):
    # p_ref: (4, 27, 256)  pooled-window patches for one image
    #        axis0 = 2x2 window element, axis1 = (cin,kh,kw), axis2 = (ho,wo)
    # w_ref: (32, 27)      conv weight [Cout, Cin*KH*KW]
    # b_ref: (32, 1)       conv bias
    # o_ref: (32, 256)     relu(maxpool(conv)) for one image, lane-dense
    w = w_ref[...]
    acc = jnp.dot(w, p_ref[0], preferred_element_type=jnp.float32)
    for e in range(1, 4):  # static unroll over the 4 pooling-window elements
        acc = jnp.maximum(acc, jnp.dot(w, p_ref[e],
                                       preferred_element_type=jnp.float32))
    # max-then-(bias,relu) == pool(relu(conv+bias)): bias constant over window, relu monotone
    o_ref[...] = jnp.maximum(acc + b_ref[...], 0.0)


def fc_kernel(x_ref, w_ref, b_ref, o_ref):
    # x_ref: (B, TF)  pooled activations chunk (lane-dense)
    # w_ref: (10, TF) fc weight chunk in ORIGINAL [out, in] layout (lane-dense)
    # b_ref: (1, 10)
    # o_ref: (B, 10)  resident accumulator across the F-reduction grid axis
    k = pl.program_id(0)

    @pl.when(k == 0)
    def _init():
        o_ref[...] = jnp.zeros_like(o_ref) + b_ref[...]

    o_ref[...] += lax.dot_general(
        x_ref[...], w_ref[...],
        dimension_numbers=(((1,), (1,)), ((), ())),   # NT contraction, no weight transpose
        preferred_element_type=jnp.float32)


# ---------------- glue (layout only, trace time) ----------------

def _im2col_pooled(x, k=3, pad=1):
    """[B,C,H,W] -> [B, 4, C*k*k, (H/2)*(W/2)] patches grouped by 2x2 pooling window."""
    B, C, H, W = x.shape
    Ho, Wo = H // 2, W // 2
    xp = jnp.pad(x, ((0, 0), (0, 0), (pad, pad), (pad, pad)))
    cols = []
    for kh in range(k):
        for kw in range(k):
            cols.append(xp[:, :, kh:kh + H, kw:kw + W])          # [B, C, H, W]
    p = jnp.stack(cols, axis=2)                                  # [B, C, 9, H, W]
    p = p.reshape(B, C, k * k, Ho, 2, Wo, 2)                     # split h->(ho,dh), w->(wo,dw)
    p = p.transpose(0, 4, 6, 1, 2, 3, 5)                         # [B, dh, dw, C, 9, ho, wo]
    return p.reshape(B, 4, C * k * k, Ho * Wo)                   # e=(dh,dw), j=(c,kh,kw), s=(ho,wo)


def simple_cnn_forward(x, conv_w, conv_b, fc_w, fc_b):
    B, Cin, H, W = x.shape
    assert H % 2 == 0 and W % 2 == 0
    Cout = conv_w.shape[0]
    Kp = Cin * 3 * 3                      # 27
    Ho, Wo = H // 2, W // 2
    S = Ho * Wo                           # 256
    F = Cout * S                          # 8192
    N = fc_w.shape[0]                     # 10

    # ---- fused conv + bias + ReLU + maxpool (grid over batch) ----
    patches = _im2col_pooled(x)                          # [B, 4, 27, 256]
    w2 = conv_w.reshape(Cout, Kp)                        # [32, 27]
    b2 = conv_b.reshape(Cout, 1)                         # [32, 1]

    pooled = pl.pallas_call(
        conv_pool_kernel,
        out_shape=jax.ShapeDtypeStruct((B, Cout, S), jnp.float32),
        grid_spec=pltpu.PrefetchScalarGridSpec(
            num_scalar_prefetch=0,
            grid=(B,),
            in_specs=[
                pl.BlockSpec((None, 4, Kp, S), lambda b: (b, 0, 0, 0)),
                pl.BlockSpec((Cout, Kp), lambda b: (0, 0)),
                pl.BlockSpec((Cout, 1), lambda b: (0, 0)),
            ],
            out_specs=pl.BlockSpec((None, Cout, S), lambda b: (b, 0, 0)),
        ),
        compiler_params=pltpu.CompilerParams(
            dimension_semantics=("parallel",)),
    )(patches, w2, b2)                                   # [B, 32, 256]

    # Contiguous reshape only (bitcast): [B, Cout, Ho*Wo] -> [B, F] is exactly
    # torch.flatten order (c, ho, wo). Dropout: identity (eval-mode semantics).
    pooled_flat = pooled.reshape(B, F)

    # ---- FC, reduction-tiled over F with output-resident accumulation ----
    TF = 2048
    assert F % TF == 0
    out = pl.pallas_call(
        fc_kernel,
        out_shape=jax.ShapeDtypeStruct((B, N), jnp.float32),
        grid_spec=pltpu.PrefetchScalarGridSpec(
            num_scalar_prefetch=0,
            grid=(F // TF,),
            in_specs=[
                pl.BlockSpec((B, TF), lambda k: (0, k)),
                pl.BlockSpec((N, TF), lambda k: (0, k)),   # fc_w kept lane-dense [10, 8192]
                pl.BlockSpec((1, N), lambda k: (0, 0)),
            ],
            out_specs=pl.BlockSpec((B, N), lambda k: (0, 0)),
        ),
        compiler_params=pltpu.CompilerParams(
            dimension_semantics=("arbitrary",)),          # reduction axis
    )(pooled_flat, fc_w, fc_b.reshape(1, N))
    return out                                            # [B, 10]


# ---------------- pure-JAX reference for validation ----------------

def reference_forward(x, conv_w, conv_b, fc_w, fc_b):
    y = lax.conv_general_dilated(
        x, conv_w, window_strides=(1, 1), padding=((1, 1), (1, 1)),
        dimension_numbers=("NCHW", "OIHW", "NCHW"))
    y = y + conv_b.reshape(1, -1, 1, 1)
    y = jnp.maximum(y, 0.0)
    y = lax.reduce_window(y, -jnp.inf, lax.max,
                          window_dimensions=(1, 1, 2, 2),
                          window_strides=(1, 1, 2, 2), padding="VALID")
    y = y.reshape(y.shape[0], -1)                         # flatten NCHW -> (C,H,W) order
    return y @ fc_w.T + fc_b


if __name__ == "__main__":
    key = jax.random.PRNGKey(0)
    k1, k2, k3, k4, k5 = jax.random.split(key, 5)

    B = 2
    x = jax.random.normal(k1, (B, 3, 32, 32), dtype=jnp.float32)
    conv_w = jax.random.normal(k2, (32, 3, 3, 3), dtype=jnp.float32) * 0.1
    conv_b = jax.random.normal(k3, (32,), dtype=jnp.float32) * 0.1
    fc_w = jax.random.normal(k4, (10, 32 * 16 * 16), dtype=jnp.float32) * 0.01
    fc_b = jax.random.normal(k5, (10,), dtype=jnp.float32) * 0.01

    fwd = jax.jit(simple_cnn_forward)
    out = jax.block_until_ready(fwd(x, conv_w, conv_b, fc_w, fc_b))

    ref = reference_forward(x, conv_w, conv_b, fc_w, fc_b)
    assert out.shape == (B, 10)
    assert jnp.allclose(out, ref, rtol=1e-4, atol=1e-4), "mismatch vs reference"

    print("KERNEL_OK")
</pallas_src>

<mosaic_0001>
module attributes {stable_mosaic.version = 11 : i64} {
  func.func @fc_kernel(%arg0: i32, %arg1: memref<2x2048xf32, #tpu.memory_space<vmem>>, %arg2: memref<10x2048xf32, #tpu.memory_space<vmem>>, %arg3: memref<1x10xf32, #tpu.memory_space<vmem>>, %arg4: memref<2x10xf32, #tpu.memory_space<vmem>>) attributes {dimension_semantics = [#tpu.dimension_semantics<arbitrary>], iteration_bounds = array<i64: 4>, scalar_prefetch = 0 : i64, scratch_operands = 0 : i64, tpu.core_type = #tpu.core_type<tc>, window_params = [{transform_indices = @transform_0, window_bounds = array<i64: 2, 2048>}, {transform_indices = @transform_1, window_bounds = array<i64: 10, 2048>}, {pipeline_mode = #tpu.pipeline_mode<synchronous>, transform_indices = @transform_2, window_bounds = array<i64: 1, 10>}, {pipeline_mode = #tpu.pipeline_mode<synchronous>, transform_indices = @transform_3, window_bounds = array<i64: 2, 10>}]} {
    %c0_i32 = arith.constant 0 : i32
    %0 = arith.cmpi eq, %arg0, %c0_i32 : i32
    %1 = arith.extui %0 : i1 to i32
    %c0_i32_0 = arith.constant 0 : i32
    %2 = arith.cmpi ne, %1, %c0_i32_0 : i32
    scf.if %2 {
      %cst_8 = arith.constant 0.000000e+00 : f32
      %9 = vector.broadcast %cst_8 : f32 to vector<2x10xf32>
      %c0_9 = arith.constant 0 : index
      %c0_10 = arith.constant 0 : index
      %10 = vector.load %arg3[%c0_9, %c0_10] : memref<1x10xf32, #tpu.memory_space<vmem>>, vector<1x10xf32>
      %11 = vector.broadcast %10 : vector<1x10xf32> to vector<2x10xf32>
      %12 = arith.addf %9, %11 : vector<2x10xf32>
      %c0_11 = arith.constant 0 : index
      %c0_12 = arith.constant 0 : index
      %13 = vector.load %arg4[%c0_11, %c0_12] : memref<2x10xf32, #tpu.memory_space<vmem>>, vector<2x10xf32>
      tpu.vector_store %arg4[%c0_11, %c0_12], %12 {strides = array<i32>} : memref<2x10xf32, #tpu.memory_space<vmem>>, vector<2x10xf32>,
    } else {
    }
    %c0 = arith.constant 0 : index
    %c0_1 = arith.constant 0 : index
    %3 = vector.load %arg4[%c0, %c0_1] : memref<2x10xf32, #tpu.memory_space<vmem>>, vector<2x10xf32>
    %c0_2 = arith.constant 0 : index
    %c0_3 = arith.constant 0 : index
    %4 = vector.load %arg1[%c0_2, %c0_3] : memref<2x2048xf32, #tpu.memory_space<vmem>>, vector<2x2048xf32>
    %c0_4 = arith.constant 0 : index
    %c0_5 = arith.constant 0 : index
    %5 = vector.load %arg2[%c0_4, %c0_5] : memref<10x2048xf32, #tpu.memory_space<vmem>>, vector<10x2048xf32>
    %cst = arith.constant dense<0.000000e+00> : vector<2x10xf32>
    %6 = tpu.matmul %4, %5, %cst {dimension_numbers = #tpu.dot_dimension_numbers<[1], [1], [0], [0], [0, 0, 1, 0], [], []>} : vector<2x2048xf32>, vector<10x2048xf32>, vector<2x10xf32> -> vector<2x10xf32>
    %7 = arith.addf %3, %6 : vector<2x10xf32>
    %c0_6 = arith.constant 0 : index
    %c0_7 = arith.constant 0 : index
    %8 = vector.load %arg4[%c0_6, %c0_7] : memref<2x10xf32, #tpu.memory_space<vmem>>, vector<2x10xf32>
    tpu.vector_store %arg4[%c0_6, %c0_7], %7 {strides = array<i32>} : memref<2x10xf32, #tpu.memory_space<vmem>>, vector<2x10xf32>,
    return
  }
  func.func @transform_0(%arg0: i32) -> (i32, i32) {
    %c0_i32 = arith.constant 0 : i32
    %c0_i32_0 = arith.constant 0 : i32
    return %c0_i32, %arg0 : i32, i32
  }
  func.func @transform_1(%arg0: i32) -> (i32, i32) {
    %c0_i32 = arith.constant 0 : i32
    %c0_i32_0 = arith.constant 0 : i32
    return %c0_i32, %arg0 : i32, i32
  }
  func.func @transform_2(%arg0: i32) -> (i32, i32) {
    %c0_i32 = arith.constant 0 : i32
    %c0_i32_0 = arith.constant 0 : i32
    %c0_i32_1 = arith.constant 0 : i32
    return %c0_i32, %c0_i32_0 : i32, i32
  }
  func.func @transform_3(%arg0: i32) -> (i32, i32) {
    %c0_i32 = arith.constant 0 : i32
    %c0_i32_0 = arith.constant 0 : i32
    %c0_i32_1 = arith.constant 0 : i32
    return %c0_i32, %c0_i32_0 : i32, i32
  }
}

module attributes {stable_mosaic.version = 11 : i64} {
  func.func @conv_pool_kernel(%arg0: i32, %arg1: memref<1x4x27x256xf32, #tpu.memory_space<vmem>>, %arg2: memref<32x27xf32, #tpu.memory_space<vmem>>, %arg3: memref<32x1xf32, #tpu.memory_space<vmem>>, %arg4: memref<1x32x256xf32, #tpu.memory_space<vmem>>) attributes {dimension_semantics = [#tpu.dimension_semantics<parallel>], iteration_bounds = array<i64: 2>, scalar_prefetch = 0 : i64, scratch_operands = 0 : i64, tpu.core_type = #tpu.core_type<tc>, window_params = [{transform_indices = @transform_0, window_bounds = array<i64: 1, 4, 27, 256>}, {pipeline_mode = #tpu.pipeline_mode<synchronous>, transform_indices = @transform_1, window_bounds = array<i64: 32, 27>}, {pipeline_mode = #tpu.pipeline_mode<synchronous>, transform_indices = @transform_2, window_bounds = array<i64: 32, 1>}, {transform_indices = @transform_3, window_bounds = array<i64: 1, 32, 256>}]} {
    %c0 = arith.constant 0 : index
    %c0_0 = arith.constant 0 : index
    %0 = vector.load %arg2[%c0, %c0_0] : memref<32x27xf32, #tpu.memory_space<vmem>>, vector<32x27xf32>
    %c0_1 = arith.constant 0 : index
    %c0_2 = arith.constant 0 : index
    %c0_3 = arith.constant 0 : index
    %c0_4 = arith.constant 0 : index
    %1 = vector.load %arg1[%c0_1, %c0_2, %c0_3, %c0_4] : memref<1x4x27x256xf32, #tpu.memory_space<vmem>>, vector<1x1x27x256xf32>
    %2 = vector.shape_cast %1 : vector<1x1x27x256xf32> to vector<27x256xf32>
    %cst = arith.constant dense<0.000000e+00> : vector<32x256xf32>
    %3 = tpu.matmul %0, %2, %cst {dimension_numbers = #tpu.dot_dimension_numbers<[1], [0], [0], [1], [0, 0, 1, 1], [], []>} : vector<32x27xf32>, vector<27x256xf32>, vector<32x256xf32> -> vector<32x256xf32>
    %c0_5 = arith.constant 0 : index
    %c1 = arith.constant 1 : index
    %c0_6 = arith.constant 0 : index
    %c0_7 = arith.constant 0 : index
    %4 = vector.load %arg1[%c0_5, %c1, %c0_6, %c0_7] : memref<1x4x27x256xf32, #tpu.memory_space<vmem>>, vector<1x1x27x256xf32>
    %5 = vector.shape_cast %4 : vector<1x1x27x256xf32> to vector<27x256xf32>
    %cst_8 = arith.constant dense<0.000000e+00> : vector<32x256xf32>
    %6 = tpu.matmul %0, %5, %cst_8 {dimension_numbers = #tpu.dot_dimension_numbers<[1], [0], [0], [1], [0, 0, 1, 1], [], []>} : vector<32x27xf32>, vector<27x256xf32>, vector<32x256xf32> -> vector<32x256xf32>
    %7 = arith.maximumf %3, %6 : vector<32x256xf32>
    %c0_9 = arith.constant 0 : index
    %c2 = arith.constant 2 : index
    %c0_10 = arith.constant 0 : index
    %c0_11 = arith.constant 0 : index
    %8 = vector.load %arg1[%c0_9, %c2, %c0_10, %c0_11] : memref<1x4x27x256xf32, #tpu.memory_space<vmem>>, vector<1x1x27x256xf32>
    %9 = vector.shape_cast %8 : vector<1x1x27x256xf32> to vector<27x256xf32>
    %cst_12 = arith.constant dense<0.000000e+00> : vector<32x256xf32>
    %10 = tpu.matmul %0, %9, %cst_12 {dimension_numbers = #tpu.dot_dimension_numbers<[1], [0], [0], [1], [0, 0, 1, 1], [], []>} : vector<32x27xf32>, vector<27x256xf32>, vector<32x256xf32> -> vector<32x256xf32>
    %11 = arith.maximumf %7, %10 : vector<32x256xf32>
    %c0_13 = arith.constant 0 : index
    %c3 = arith.constant 3 : index
    %c0_14 = arith.constant 0 : index
    %c0_15 = arith.constant 0 : index
    %12 = vector.load %arg1[%c0_13, %c3, %c0_14, %c0_15] : memref<1x4x27x256xf32, #tpu.memory_space<vmem>>, vector<1x1x27x256xf32>
    %13 = vector.shape_cast %12 : vector<1x1x27x256xf32> to vector<27x256xf32>
    %cst_16 = arith.constant dense<0.000000e+00> : vector<32x256xf32>
    %14 = tpu.matmul %0, %13, %cst_16 {dimension_numbers = #tpu.dot_dimension_numbers<[1], [0], [0], [1], [0, 0, 1, 1], [], []>} : vector<32x27xf32>, vector<27x256xf32>, vector<32x256xf32> -> vector<32x256xf32>
    %15 = arith.maximumf %11, %14 : vector<32x256xf32>
    %c0_17 = arith.constant 0 : index
    %c0_18 = arith.constant 0 : index
    %16 = vector.load %arg3[%c0_17, %c0_18] : memref<32x1xf32, #tpu.memory_space<vmem>>, vector<32x1xf32>
    %17 = vector.broadcast %16 : vector<32x1xf32> to vector<32x256xf32>
    %18 = arith.addf %15, %17 : vector<32x256xf32>
    %cst_19 = arith.constant 0.000000e+00 : f32
    %19 = vector.broadcast %cst_19 : f32 to vector<32x256xf32>
    %20 = arith.maximumf %18, %19 : vector<32x256xf32>
    %c0_20 = arith.constant 0 : index
    %c0_21 = arith.constant 0 : index
    %c0_22 = arith.constant 0 : index
    %21 = vector.load %arg4[%c0_20, %c0_21, %c0_22] : memref<1x32x256xf32, #tpu.memory_space<vmem>>, vector<1x32x256xf32>
    %22 = vector.shape_cast %21 : vector<1x32x256xf32> to vector<32x256xf32>
    %23 = vector.shape_cast %20 : vector<32x256xf32> to vector<1x32x256xf32>
    tpu.vector_store %arg4[%c0_20, %c0_21, %c0_22], %23 {strides = array<i32>} : memref<1x32x256xf32, #tpu.memory_space<vmem>>, vector<1x32x256xf32>,
    return
  }
  func.func @transform_0(%arg0: i32) -> (i32, i32, i32, i32) {
    %c0_i32 = arith.constant 0 : i32
    %c0_i32_0 = arith.constant 0 : i32
    %c0_i32_1 = arith.constant 0 : i32
    %c0_i32_2 = arith.constant 0 : i32
    return %arg0, %c0_i32, %c0_i32_0, %c0_i32_1 : i32, i32, i32, i32
  }
  func.func @transform_1(%arg0: i32) -> (i32, i32) {
    %c0_i32 = arith.constant 0 : i32
    %c0_i32_0 = arith.constant 0 : i32
    %c0_i32_1 = arith.constant 0 : i32
    return %c0_i32, %c0_i32_0 : i32, i32
  }
  func.func @transform_2(%arg0: i32) -> (i32, i32) {
    %c0_i32 = arith.constant 0 : i32
    %c0_i32_0 = arith.constant 0 : i32
    %c0_i32_1 = arith.constant 0 : i32
    return %c0_i32, %c0_i32_0 : i32, i32
  }
  func.func @transform_3(%arg0: i32) -> (i32, i32, i32) {
    %c0_i32 = arith.constant 0 : i32
    %c0_i32_0 = arith.constant 0 : i32
    %c0_i32_1 = arith.constant 0 : i32
    return %arg0, %c0_i32, %c0_i32_0 : i32, i32, i32
  }
}

</mosaic_0001>

<bundles_post_ra>
// kernel: simple_cnn_forward.3
= control target key start
LH: loop header
LB: loop body
LE: loop exit
PB: predicated region body
PF: predicated region fallthrough
CT: control target
= control target key end

     0   :  { %8 = vsyncpa [#allocation4], 0  ;;  %s1155_s12 = smov 0   ;;  %s1157_s13 = smov 0   ;;  %s1332_s0 = inlined_call_operand.vmem [shape: f32[2,8192], index: 0, kind: input, shape index: {}]   ;;  %s1333_s1 = inlined_call_operand.vmem [shape: f32[10,8192], index: 1, kind: input, shape index: {}]   ;;  %s1334_s2 = inlined_call_operand.vmem [shape: f32[1,10], index: 2, kind: input, shape index: {}]   ;;  %s1335_s3 = inlined_call_operand.hbm [shape: f32[2,10], index: 3, kind: output, shape index: {}]  }
   0x1   :  { %s1159_s14 = smov 0  }
   0x2 LB: > { %s1171_s15 = sadd.s32 4294967295, %s1131_s14   ;;  %s1174_s16 = sadd.s32 1, %s1131_s14   ;;  %s1131_s14 = sphi %s1159_s14, %s1338_s14   ;;  %s1127_s13 = sphi %s1157_s13, %s1337_s13   ;;  %s1123_s12 = sphi %s1155_s12, %s1336_s12  }
   0x3   : > { %s44_s17 = ssub.s32 %s1131_s14, %s1174_s16  ;;  %s47_s18 = sadd.s32 1, %s1127_s13 }
   0x4   : > { %p45_p0 = scmp.eq.s32.totalorder %s44_s17, 0  ;;  %p54_p1 = scmp.ne.s32.totalorder %s1127_s13, %s1123_s12 }
   0x5   : > { %p55_p2 = scmp.eq.s32.totalorder %s1131_s14, 0  ;;  %p1030_p4 = scmp.ge.s32.totalorder %s1131_s14, 4 }
   0x6   : > { %s1183_s19 = scalar_select %p45_p0, %s1127_s13, %s47_s18  }
   0x7   : > { %p56_p3 = por %p55_p2, %p54_p1  ;;  %125 = sbr.rel (%p1030_p4) target bundleno = 32 (0x20), region = 20 }
   0xc   : > { %137 = sbr.rel (!%p56_p3) target bundleno = 32 (0x20), region = 28  ;;  %s139_s20 = sand.u32 (%p56_p3), 1, %s1127_s13  }
   0xd   : > { %s1044_s21 = sshll.u32 (%p56_p3), %s1131_s14, 7  ;;  %s1031_s22 = sshll.u32 (%p56_p3), %s139_s20, 8 }
   0xe   : > { %s1191_s25 = scalar_lea.vmem (%p56_p3), %s1333_s1, %s1044_s21  ;;  %s1196_s26 = scalar_lea.vmem (%p56_p3), [#allocation2], %s1031_s22 }
   0xf   : > { %v157_v0 = vld [vmem:[%s1191_s25] sm:$0xff] (%p56_p3)  ;;  %v159_v1 = vld [vmem:[%s1191_s25 + $0x8] sm:$0xff] (%p56_p3)  ;;  %v161_v2 = vld [vmem:[%s1191_s25 + $0x10] sm:$0xff] (%p56_p3) }
  0x10   : > { %158 = vst [vmem:[%s1196_s26] sm:$0xff] (%p56_p3), %v157_v0  ;;  %160 = vst [vmem:[%s1196_s26 + $0x8] sm:$0xff] (%p56_p3), %v159_v1  ;;  %v163_v3 = vld [vmem:[%s1191_s25 + $0x18] sm:$0xff] (%p56_p3)  ;;  %v165_v4 = vld [vmem:[%s1191_s25 + $0x20] sm:$0xff] (%p56_p3) }
  0x11   : > { %162 = vst [vmem:[%s1196_s26 + $0x10] sm:$0xff] %v161_v2  ;;  %v167_v5 = vld [vmem:[%s1191_s25 + $0x28] sm:$0xff]  ;;  %164 = vst [vmem:[%s1196_s26 + $0x18] sm:$0xff] %v163_v3  ;;  %v169_v6 = vld [vmem:[%s1191_s25 + $0x30] sm:$0xff] }
  0x12   : > { %166 = vst [vmem:[%s1196_s26 + $0x20] sm:$0xff] %v165_v4  ;;  %168 = vst [vmem:[%s1196_s26 + $0x28] sm:$0xff] %v167_v5  ;;  %v171_v7 = vld [vmem:[%s1191_s25 + $0x38] sm:$0xff]  ;;  %v173_v8 = vld [vmem:[%s1191_s25 + $0x40] sm:$0xff] }
  0x13   : > { %170 = vst [vmem:[%s1196_s26 + $0x30] sm:$0xff] %v169_v6  ;;  %172 = vst [vmem:[%s1196_s26 + $0x38] sm:$0xff] %v171_v7  ;;  %v175_v9 = vld [vmem:[%s1191_s25 + $0x48] sm:$0xff]  ;;  %v177_v10 = vld [vmem:[%s1191_s25 + $0x50] sm:$0xff] }
  0x14   : > { %174 = vst [vmem:[%s1196_s26 + $0x40] sm:$0xff] %v173_v8  ;;  %v179_v11 = vld [vmem:[%s1191_s25 + $0x58] sm:$0xff]  ;;  %176 = vst [vmem:[%s1196_s26 + $0x48] sm:$0xff] %v175_v9  ;;  %v181_v12 = vld [vmem:[%s1191_s25 + $0x60] sm:$0xff] }
  0x15   : > { %178 = vst [vmem:[%s1196_s26 + $0x50] sm:$0xff] %v177_v10  ;;  %180 = vst [vmem:[%s1196_s26 + $0x58] sm:$0xff] %v179_v11  ;;  %v183_v13 = vld [vmem:[%s1191_s25 + $0x68] sm:$0xff]  ;;  %v185_v14 = vld [vmem:[%s1191_s25 + $0x70] sm:$0xff] }
  0x16   : > { %182 = vst [vmem:[%s1196_s26 + $0x60] sm:$0xff] %v181_v12  ;;  %184 = vst [vmem:[%s1196_s26 + $0x68] sm:$0xff] %v183_v13  ;;  %v187_v15 = vld [vmem:[%s1191_s25 + $0x78] sm:$0xff]  ;;  %v189_v16 = vld [vmem:[%s1191_s25 + $0x200] sm:$0xff] }
  0x17   : > { %186 = vst [vmem:[%s1196_s26 + $0x70] sm:$0xff] %v185_v14  ;;  %v191_v17 = vld [vmem:[%s1191_s25 + $0x208] sm:$0xff]  ;;  %188 = vst [vmem:[%s1196_s26 + $0x78] sm:$0xff] %v187_v15  ;;  %v193_v18 = vld [vmem:[%s1191_s25 + $0x210] sm:$0xff] }
  0x18   : > { %190 = vst [vmem:[%s1196_s26 + $0x80] sm:$0xff] %v189_v16  ;;  %192 = vst [vmem:[%s1196_s26 + $0x88] sm:$0xff] %v191_v17  ;;  %v195_v19 = vld [vmem:[%s1191_s25 + $0x218] sm:$0xff]  ;;  %v197_v20 = vld [vmem:[%s1191_s25 + $0x220] sm:$0xff] }
  0x19   : > { %194 = vst [vmem:[%s1196_s26 + $0x90] sm:$0xff] %v193_v18  ;;  %196 = vst [vmem:[%s1196_s26 + $0x98] sm:$0xff] %v195_v19  ;;  %v199_v21 = vld [vmem:[%s1191_s25 + $0x228] sm:$0xff]  ;;  %v201_v22 = vld [vmem:[%s1191_s25 + $0x230] sm:$0xff] }
  0x1a   : > { %198 = vst [vmem:[%s1196_s26 + $0xa0] sm:$0xff] %v197_v20  ;;  %v203_v23 = vld [vmem:[%s1191_s25 + $0x238] sm:$0xff]  ;;  %200 = vst [vmem:[%s1196_s26 + $0xa8] sm:$0xff] %v199_v21  ;;  %v205_v24 = vld [vmem:[%s1191_s25 + $0x240] sm:$0xff] }
  0x1b   : > { %202 = vst [vmem:[%s1196_s26 + $0xb0] sm:$0xff] %v201_v22  ;;  %204 = vst [vmem:[%s1196_s26 + $0xb8] sm:$0xff] %v203_v23  ;;  %v207_v25 = vld [vmem:[%s1191_s25 + $0x248] sm:$0xff]  ;;  %v209_v26 = vld [vmem:[%s1191_s25 + $0x250] sm:$0xff] }
  0x1c   : > { %206 = vst [vmem:[%s1196_s26 + $0xc0] sm:$0xff] %v205_v24  ;;  %208 = vst [vmem:[%s1196_s26 + $0xc8] sm:$0xff] %v207_v25  ;;  %v211_v27 = vld [vmem:[%s1191_s25 + $0x258] sm:$0xff]  ;;  %v213_v28 = vld [vmem:[%s1191_s25 + $0x260] sm:$0xff] }
  0x1d   : > { %210 = vst [vmem:[%s1196_s26 + $0xd0] sm:$0xff] %v209_v26  ;;  %v215_v29 = vld [vmem:[%s1191_s25 + $0x268] sm:$0xff]  ;;  %212 = vst [vmem:[%s1196_s26 + $0xd8] sm:$0xff] %v211_v27  ;;  %v217_v30 = vld [vmem:[%s1191_s25 + $0x270] sm:$0xff] }
  0x1e   : > { %214 = vst [vmem:[%s1196_s26 + $0xe0] sm:$0xff] %v213_v28  ;;  %216 = vst [vmem:[%s1196_s26 + $0xe8] sm:$0xff] %v215_v29  ;;  %v219_v31 = vld [vmem:[%s1191_s25 + $0x278] sm:$0xff] }
  0x1f   : > { %218 = vst [vmem:[%s1196_s26 + $0xf0] sm:$0xff] %v217_v30  ;;  %220 = vst [vmem:[%s1196_s26 + $0xf8] sm:$0xff] %v219_v31 }
  0x20 PF: > { %p1034_p5 = scmp.ge.s32.totalorder %s1131_s14, 1  ;;  %p225_p6 = scmp.lt.s32.totalorder %s1131_s14, 5 }
  0x22   : > { %p226_p7 = pnand %p1034_p5, %p225_p6 }
  0x23   : > { %s232_s27 = sand.u32 (!%p226_p7), 1, %s1123_s12   ;;  %s1036_s28 = sshll.u32 (!%p226_p7), %s1171_s15, 4 }
  0x24   : > { %229 = sbr.rel (%p226_p7) target bundleno = 289 (0x121), region = 51  ;;  %s1035_s29 = sshll.u32 (!%p226_p7), %s232_s27, 8 }
  0x25   : > { %p256_p8 = scmp.lt.s32.totalorder (!%p226_p7), %s1036_s28, 63  ;;  %s1268_s7 = scalar_lea.vmem (!%p226_p7), [#allocation2], %s1035_s29 }
  0x26   : > { %p1038_p9 = scmp.ne.s32.totalorder (!%p226_p7), %s1171_s15, 0 }
  0x29   : > { %s1340_s28 = smov (!%p256_p8, %s1036_s28), 63  ;;  %265 = sbr.rel (%p1038_p9) target bundleno = 48 (0x30), region = 59 }
  0x2a   : > { %s1037_s30 = sshll.u32 %s1340_s28, 1 }
  0x2b   : > { %s1266_s6 = scalar_lea.vmem %s1332_s0, %s1037_s30 }
  0x2e   : > { %v1039_v32 = vld [vmem:[%s1334_s2] ss:$0 sm:$0xff]  ;;  %vm274_vm0 = vcmask 74752  }
  0x2f   : > { %275 = vst.msk [vmem:[#allocation3] sm:$0x3] %vm274_vm0, %v1039_v32 }
  0x30 PF: > { %v298_v33 = vld [vmem:[%s1268_s7 + $0x88] sm:$0x3]  ;;  %v300_v34 = vld [vmem:[%s1268_s7 + $0x98] sm:$0x3]  ;;  %v297_v35 = vld [vmem:[%s1268_s7 + $0x80] sm:$0x3]  ;;  %v321_v36 = vlaneseq }
  0x31   : > { %429 = vmatprep.subr.mxu0 %v298_v33  ;;  %499 = vmatprep.subr.mxu1 %v300_v34  ;;  %v299_v37 = vld [vmem:[%s1268_s7 + $0x90] sm:$0x3]  ;;  %v282_v38 = vld [vmem:[%s1268_s7 + $0x8] sm:$0xff]  ;;  %v284_v39 = vld [vmem:[%s1268_s7 + $0x18] sm:$0xff]  ;;  %v1133_v41 = vmov 1983009808  }
  0x32   : > { %430 = vmatpush1.xpose.msra.mxu0 %v297_v35  ;;  %500 = vmatpush1.xpose.msra.mxu1 %v299_v37  ;;  %v277_v40 = vld [vmem:[%s1266_s6] sm:$0xff]  ;;  %v319_v42 = vunpack.c.l.s4 %v1133_v41  ;;  %v322_v43 = vshrl.u32 %v321_v36, 7  ;;  %v283_v45 = vld [vmem:[%s1268_s7 + $0x10] sm:$0xff]  ;;  %v302_v48 = vld [vmem:[%s1268_s7 + $0xa8] sm:$0x3]  ;;  %s1134_s10 = smov [#allocation3]  }
  0x33   : > { %431 = vmatprep.subr.mxu0 %v282_v38  ;;  %501 = vmatprep.subr.mxu1 %v284_v39  ;;  %v281_v44 = vld [vmem:[%s1268_s7] sm:$0xff]  ;;  %v317_v47 = vcombine.high %v277_v40, %v277_v40  ;;  %v304_v49 = vld [vmem:[%s1268_s7 + $0xb8] sm:$0x3]  ;;  %v278_v50 = vld [vmem:[%s1266_s6 + $0x8] sm:$0xff]  ;;  %s971_s11 = sshll.u32 %s1134_s10, 4  ;;  %vm962_vm1 = vcmask 74752   ;;  %s972_s11 = int_to_ptr.vmem [resolvable:$true] %s971_s11 }
  0x34   : > { %v320_v46 = vunpack.c.0.s8 %v319_v42  ;;  %v334_v52 = vcombine.high %v278_v50, %v278_v50  ;;  %v279_v57 = vld [vmem:[%s1266_s6 + $0x10] sm:$0xff]  ;;  %v301_v60 = vld [vmem:[%s1268_s7 + $0xa0] sm:$0x3]  ;;  %v286_v62 = vld [vmem:[%s1268_s7 + $0x28] sm:$0xff]  ;;  %p1049_p10 = scmp.eq.s32.totalorder %s1171_s15, 3  ;;  %s1081_s12 = scalar_lea.vmem %s972_s11, 32 }
  0x35   : > { %v303_v61 = vld [vmem:[%s1268_s7 + $0xb0] sm:$0x3]  ;;  %v288_v63 = vld [vmem:[%s1268_s7 + $0x38] sm:$0xff]  ;;  %v351_v2 = vcombine.high %v279_v57, %v279_v57  ;;  %v285_v3 = vld [vmem:[%s1268_s7 + $0x20] sm:$0xff]  ;;  %p1082_p11 = scmp.ne.s32.totalorder %s972_s11, %s1081_s12  ;;  %p1088_p0 = scmp.lt.s32.totalorder %s972_s11, %s972_s11 }
  0x36   : > { %432 = vmatpush1.xpose.msra.mxu0 %v281_v44  ;;  %502 = vmatpush1.xpose.msra.mxu1 %v283_v45  ;;  %v323_v51 = vsub.s32 %v320_v46, %v322_v43  ;;  %v287_v4 = vld [vmem:[%s1268_s7 + $0x30] sm:$0xff]  ;;  %v306_v5 = vld [vmem:[%s1268_s7 + $0xc8] sm:$0x3]  ;;  %v308_v6 = vld [vmem:[%s1268_s7 + $0xd8] sm:$0x3]  ;;  %p1089_p1 = scmp.lt.s32.totalorder %s1081_s12, %s1081_s12 }
  0x37   : > { %569 = vmatprep.subr.mxu0 %v302_v48  ;;  %639 = vmatprep.subr.mxu1 %v304_v49  ;;  %v280_v9 = vld [vmem:[%s1266_s6 + $0x18] sm:$0xff]  ;;  %v305_v10 = vld [vmem:[%s1268_s7 + $0xc0] sm:$0x3]  ;;  %v307_v11 = vld [vmem:[%s1268_s7 + $0xd0] sm:$0x3]  ;;  %p1083_p12 = pnand %p1082_p11, %p1049_p10 }
  0x38   : > { %v324_v53 = vrot.slane %v277_v40, %v323_v51  ;;  %v331_v54 = vrot.slane %v317_v47, %v323_v51  ;;  %v341_v55 = vrot.slane %v278_v50, %v323_v51  ;;  %v348_v56 = vrot.slane %v334_v52, %v323_v51  ;;  %v290_v12 = vld [vmem:[%s1268_s7 + $0x48] sm:$0xff]  ;;  %v292_v13 = vld [vmem:[%s1268_s7 + $0x58] sm:$0xff]  ;;  %v289_v17 = vld [vmem:[%s1268_s7 + $0x40] sm:$0xff]  ;;  %p1090_p2 = por %p1089_p1, %p1088_p0 }
  0x39   : > { %v358_v7 = vrot.slane %v279_v57, %v323_v51  ;;  %v365_v8 = vrot.slane %v351_v2, %v323_v51  ;;  %v368_v16 = vcombine.high %v280_v9, %v280_v9  ;;  %v291_v18 = vld [vmem:[%s1268_s7 + $0x50] sm:$0xff]  ;;  %v310_v19 = vld [vmem:[%s1268_s7 + $0xe8] sm:$0x3]  ;;  %v312_v20 = vld [vmem:[%s1268_s7 + $0xf8] sm:$0x3]  ;;  %v375_v21 = vrot.slane %v280_v9, %v323_v51  ;;  %p1084_p13 = pneg %p1083_p12 }
  0x3a   : > { %v332_v58 = vcombine.high %v324_v53, %v324_v53  ;;  %v333_v59 = vcombine.high %v331_v54, %v331_v54  ;;  %v349_v0 = vcombine.high %v341_v55, %v341_v55  ;;  %v350_v1 = vcombine.high %v348_v56, %v348_v56  ;;  %v309_v23 = vld [vmem:[%s1268_s7 + $0xe0] sm:$0x3]  ;;  %v311_v24 = vld [vmem:[%s1268_s7 + $0xf0] sm:$0x3]  ;;  %v294_v25 = vld [vmem:[%s1268_s7 + $0x68] sm:$0xff] }
  0x3b   : > { %v366_v14 = vcombine.high %v358_v7, %v358_v7  ;;  %v367_v15 = vcombine.high %v365_v8, %v365_v8  ;;  %v382_v22 = vrot.slane %v368_v16, %v323_v51  ;;  %v296_v26 = vld [vmem:[%s1268_s7 + $0x78] sm:$0xff]  ;;  %v383_v27 = vcombine.high %v375_v21, %v375_v21  ;;  %v293_v29 = vld [vmem:[%s1268_s7 + $0x60] sm:$0xff]  ;;  %v295_v30 = vld [vmem:[%s1268_s7 + $0x70] sm:$0xff]  ;;  %p1091_p3 = pnand %p1090_p2, %p1084_p13 }
  0x3c   : > { %465 = vmatprep.mubr.f32.mxu0 %v332_v58  ;;  %535 = vmatprep.mubr.f32.mxu1 %v333_v59  ;;  %v276_v51 = vld [vmem:[#allocation3] sm:$0x3] }
  0x3d   : > { %466 = vmatmul.mubr.f32.vlgmr.msra.gmra.mxu0 %v324_v53  ;;  %536 = vmatmul.mubr.f32.vlgmr.msra.gmra.mxu1 %v331_v54  ;;  %v384_v28 = vcombine.high %v382_v22, %v382_v22 }
  0x3e   : > { %570 = vmatpush1.xpose.msra.mxu0 %v301_v60  ;;  %640 = vmatpush1.xpose.msra.mxu1 %v303_v61 }
  0x3f   : > { %571 = vmatprep.subr.mxu0 %v286_v62  ;;  %641 = vmatprep.subr.mxu1 %v288_v63 }
  0x40   : > { %605 = vmatprep.mubr.f32.mxu0 %v349_v0  ;;  %675 = vmatprep.mubr.f32.mxu1 %v350_v1 }
  0x42   : > { %572 = vmatpush1.xpose.msra.mxu0 %v285_v3  ;;  %642 = vmatpush1.xpose.msra.mxu1 %v287_v4 }
  0x43   : > { %709 = vmatprep.subr.mxu0 %v306_v5  ;;  %779 = vmatprep.subr.mxu1 %v308_v6 }
  0x45   : > { %606 = vmatmul.mubr.f32.vlgmr.msra.gmra.mxu0 %v341_v55  ;;  %676 = vmatmul.mubr.f32.vlgmr.msra.gmra.mxu1 %v348_v56 }
  0x46   : > { %710 = vmatpush1.xpose.msra.mxu0 %v305_v10  ;;  %780 = vmatpush1.xpose.msra.mxu1 %v307_v11 }
  0x47   : > { %711 = vmatprep.subr.mxu0 %v290_v12  ;;  %781 = vmatprep.subr.mxu1 %v292_v13 }
  0x48   : > { %745 = vmatprep.mubr.f32.mxu0 %v366_v14  ;;  %815 = vmatprep.mubr.f32.mxu1 %v367_v15 }
  0x4a   : > { %712 = vmatpush1.xpose.msra.mxu0 %v289_v17  ;;  %782 = vmatpush1.xpose.msra.mxu1 %v291_v18 }
  0x4b   : > { %849 = vmatprep.subr.mxu0 %v310_v19  ;;  %919 = vmatprep.subr.mxu1 %v312_v20 }
  0x4d   : > { %746 = vmatmul.mubr.f32.vlgmr.msra.gmra.mxu0 %v358_v7  ;;  %816 = vmatmul.mubr.f32.vlgmr.msra.gmra.mxu1 %v365_v8 }
  0x4e   : > { %850 = vmatpush1.xpose.msra.mxu0 %v309_v23  ;;  %920 = vmatpush1.xpose.msra.mxu1 %v311_v24 }
  0x4f   : > { %851 = vmatprep.subr.mxu0 %v294_v25  ;;  %921 = vmatprep.subr.mxu1 %v296_v26 }
  0x50   : > { %885 = vmatprep.mubr.f32.mxu0 %v383_v27  ;;  %955 = vmatprep.mubr.f32.mxu1 %v384_v28 }
  0x52   : > { %852 = vmatpush1.xpose.msra.mxu0 %v293_v29  ;;  %922 = vmatpush1.xpose.msra.mxu1 %v295_v30 }
  0x55   : > { %886 = vmatmul.mubr.f32.vlgmr.msra.gmra.mxu0 %v375_v21  ;;  %956 = vmatmul.mubr.f32.vlgmr.msra.gmra.mxu1 %v382_v22 }
  0xfd   : > { %v467_v31 = vpop.f32.mrf.mxu0  ;;  %v537_v32 = vpop.f32.mrf.mxu1 }
  0xfe   : > { %v538_v39 = vadd.f32 %v537_v32, %v467_v31 }
  0xff   : > { %v469_v33 = vpop.f32.mrf.mxu0  ;;  %v539_v34 = vpop.f32.mrf.mxu1 }
 0x105   : > { %v607_v35 = vpop.f32.mrf.mxu0  ;;  %v677_v36 = vpop.f32.mrf.mxu1 }
 0x106   : > { %v608_v40 = vadd.f32 %v607_v35, %v538_v39 }
 0x107   : > { %v609_v37 = vpop.f32.mrf.mxu0  ;;  %v679_v38 = vpop.f32.mrf.mxu1 }
 0x108   : > { %v678_v43 = vadd.f32 %v677_v36, %v608_v40 }
 0x10d   : > { %v747_v41 = vpop.f32.mrf.mxu0  ;;  %v817_v42 = vpop.f32.mrf.mxu1 }
 0x10e   : > { %v748_v46 = vadd.f32 %v747_v41, %v678_v43 }
 0x10f   : > { %v749_v44 = vpop.f32.mrf.mxu0  ;;  %v819_v45 = vpop.f32.mrf.mxu1 }
 0x110   : > { %v818_v47 = vadd.f32 %v817_v42, %v748_v46 }
 0x115   : > { %v887_v48 = vpop.f32.mrf.mxu0  ;;  %v957_v49 = vpop.f32.mrf.mxu1 }
 0x116   : > { %v888_v50 = vadd.f32 %v887_v48, %v818_v47 }
 0x117   : > { %v889_v52 = vpop.f32.mrf.mxu0  ;;  %v959_v53 = vpop.f32.mrf.mxu1 }
 0x118   : > { %v958_v54 = vadd.f32 %v957_v49, %v888_v50 }
 0x11a   : > { %v961_v55 = vadd.f32 %v958_v54, %v276_v51 }
 0x11c   : > { %963 = vst.msk [vmem:[#allocation3] sm:$0x3] %vm962_vm1, %v961_v55 }
 0x11d   : > { %1094 = shalt.err (!%p1091_p3)
}
 0x11e   : > { %1046 = dma.vmem_to_hbm [thread:$0]  (%p1049_p10), %s972_s11, 32, %s1335_s3, [#allocation4]  }
 0x11f   : > { %1118 = dma.done.wait (%p1049_p10), [#allocation4], 32  }
 0x120   : > { %1120 = vsyncadd (%p1049_p10), [#allocation4], 4294967264 }
 0x121 PF: > { %p11_p4 = scmp.ge.s32.totalorder %s1174_s16, 6   ;;  %s1336_s12 = smov %s1127_s13 }
 0x122   : > { %s1337_s13 = smov %s1183_s19  ;;  %s1338_s14 = smov %s1174_s16 }
 0x123   :  { %13 = sbr.rel (!%p11_p4) target bundleno = 2 (0x2), region = 94 }
 0x128   :  { %984 = vsyncpa [#allocation4], 1 }
 0x129   :  { %986 = vsyncpa [#allocation4 + $0x1], 1 }

// kernel: simple_cnn_forward.2
= control target key start
LH: loop header
LB: loop body
LE: loop exit
PB: predicated region body
PF: predicated region fallthrough
CT: control target
= control target key end

     0   :  { %s834_s12 = smov 0   ;;  %s963_s0 = inlined_call_operand.vmem [shape: f32[2,4,27,256], index: 0, kind: input, shape index: {}]   ;;  %s964_s1 = inlined_call_operand.vmem [shape: f32[32,27], index: 1, kind: input, shape index: {}]   ;;  %s965_s2 = inlined_call_operand.vmem [shape: f32[32,1], index: 2, kind: input, shape index: {}]   ;;  %s966_s3 = inlined_call_operand.vmem [shape: f32[2,32,256], index: 3, kind: output, shape index: {}]  }
   0x1 LB: > { %s731_s13 = sadd.s32 4294967295, %s810_s12   ;;  %p735_p0 = scmp.ge.s32.totalorder %s810_s12, 1  ;;  %s810_s12 = sphi %s834_s12, %s13_s12  }
   0x2   : > { %p137_p1 = scmp.lt.s32.totalorder %s810_s12, 3 }
   0x4   : > { %p138_p2 = pnand %p735_p0, %p137_p1 }
   0x5   : > { %p161_p3 = scmp.lt.s32.totalorder (!%p138_p2), %s731_s13, 1 }
   0x6   : > { %141 = sbr.rel (%p138_p2) target bundleno = 255 (0xff), region = 32 }
   0xb   : > { %v812_v0 = vmov 0.0   ;;  %v628_v1 = vld [vmem:[%s965_s2] sm:$0xff]  ;;  %s968_s13 = smov (!%p161_p3, %s731_s13), 1  ;;  %v813_v2 = vmov 0   ;;  %v630_v3 = vld [vmem:[%s965_s2 + $0x10] sm:$0xff]  ;;  %vm196_vm0 = vcmask 1042432  }
   0xc   : > { %267 = vmatprep.mubr.f32.mxu0 %v812_v0  ;;  %371 = vmatprep.mubr.f32.mxu1 %v812_v0  ;;  %s790_s18 = sshll.u32 %s968_s13, 8  ;;  %v171_v20 = vld [vmem:[%s964_s1] sm:$0xff]  ;;  %vm183_vm1 = vcmask 220160   ;;  %v172_v25 = vld [vmem:[%s964_s1 + $0x8] sm:$0xff]  ;;  %v173_v30 = vld [vmem:[%s964_s1 + $0x10] sm:$0xff]  ;;  %s791_s7 = sshll.u32 %s968_s13, 6 }
   0xd   : > { %802 = vset.pattern.permute.xlu0 %v813_v2  ;;  %803 = vset.pattern.permute.xlu1 %v813_v2  ;;  %s856_s21 = scalar_lea.vmem %s963_s0, %s790_s18  ;;  %v174_v35 = vld [vmem:[%s964_s1 + $0x18] sm:$0xff]  ;;  %v629_v40 = vld [vmem:[%s965_s2 + $0x8] sm:$0xff]  ;;  %s950_s10 = scalar_lea.vmem %s966_s3, %s791_s7 }
   0xe   : > { %634 = vperm.xlu0 %802, %v628_v1   ;;  %644 = vperm.xlu1 %803, %v630_v3   ;;  %v182_v4 = vld [vmem:[%s856_s21 + $0x38] sm:$0x7]  ;;  %v181_v6 = vld [vmem:[%s856_s21 + $0x30] sm:$0x7]  ;;  %v180_v8 = vld [vmem:[%s856_s21 + $0x28] sm:$0xff] }
   0xf   : > { %v753_v5 = vld [vmem:[%s856_s21 + $0x78] sm:$0x7]  ;;  %740 = vmatprep.subr.msk.mxu0 %vm196_vm0, %v182_v4  ;;  %v752_v7 = vld [vmem:[%s856_s21 + $0x70] sm:$0x7]  ;;  %v751_v9 = vld [vmem:[%s856_s21 + $0x68] sm:$0xff] }
  0x10   : > { %754 = vmatprep.subr.msk.mxu1 %vm196_vm0, %v753_v5  ;;  %741 = vmatpush1.msk.msra.mxu0 %vm196_vm0, %v181_v6  ;;  %v179_v10 = vld [vmem:[%s856_s21 + $0x20] sm:$0xff]  ;;  %v178_v12 = vld [vmem:[%s856_s21 + $0x18] sm:$0xff]  ;;  %v177_v14 = vld [vmem:[%s856_s21 + $0x10] sm:$0xff] }
  0x11   : > { %755 = vmatpush1.msk.msra.mxu1 %vm196_vm0, %v752_v7  ;;  %v750_v11 = vld [vmem:[%s856_s21 + $0x60] sm:$0xff]  ;;  %229 = vmatprep.subr.mxu0 %v180_v8  ;;  %v749_v13 = vld [vmem:[%s856_s21 + $0x58] sm:$0xff]  ;;  %v748_v15 = vld [vmem:[%s856_s21 + $0x50] sm:$0xff] }
  0x12   : > { %333 = vmatprep.subr.mxu1 %v751_v9  ;;  %230 = vmatpush1.msra.mxu0 %v179_v10  ;;  %v176_v16 = vld [vmem:[%s856_s21 + $0x8] sm:$0xff]  ;;  %v175_v18 = vld [vmem:[%s856_s21] sm:$0xff]  ;;  %v767_v21 = vld [vmem:[%s856_s21 + $0xb8] sm:$0x7] }
  0x13   : > { %334 = vmatpush1.msra.mxu1 %v750_v11  ;;  %v747_v17 = vld [vmem:[%s856_s21 + $0x48] sm:$0xff]  ;;  %231 = vmatprep.subr.mxu0 %v178_v12  ;;  %v746_v19 = vld [vmem:[%s856_s21 + $0x40] sm:$0xff]  ;;  %v781_v22 = vld [vmem:[%s856_s21 + $0xf8] sm:$0x7] }
  0x14   : > { %335 = vmatprep.subr.mxu1 %v749_v13  ;;  %232 = vmatpush1.msra.mxu0 %v177_v14  ;;  %v766_v23 = vld [vmem:[%s856_s21 + $0xb0] sm:$0x7]  ;;  %v765_v26 = vld [vmem:[%s856_s21 + $0xa8] sm:$0xff]  ;;  %v764_v28 = vld [vmem:[%s856_s21 + $0xa0] sm:$0xff] }
  0x15   : > { %336 = vmatpush1.msra.mxu1 %v748_v15  ;;  %233 = vmatprep.subr.mxu0 %v176_v16  ;;  %v780_v24 = vld [vmem:[%s856_s21 + $0xf0] sm:$0x7]  ;;  %v779_v27 = vld [vmem:[%s856_s21 + $0xe8] sm:$0xff]  ;;  %v778_v29 = vld [vmem:[%s856_s21 + $0xe0] sm:$0xff] }
  0x16   : > { %337 = vmatprep.subr.mxu1 %v747_v17  ;;  %234 = vmatpush1.msra.mxu0 %v175_v18  ;;  %v763_v31 = vld [vmem:[%s856_s21 + $0x98] sm:$0xff]  ;;  %v762_v33 = vld [vmem:[%s856_s21 + $0x90] sm:$0xff]  ;;  %v761_v36 = vld [vmem:[%s856_s21 + $0x88] sm:$0xff] }
  0x17   : > { %338 = vmatpush1.msra.mxu1 %v746_v19  ;;  %742 = vmatmul.mubr.msk.f32.vlgmr.msra.gmra.mxu0 %vm183_vm1, %v171_v20  ;;  %v777_v32 = vld [vmem:[%s856_s21 + $0xd8] sm:$0xff]  ;;  %v776_v34 = vld [vmem:[%s856_s21 + $0xd0] sm:$0xff]  ;;  %v775_v37 = vld [vmem:[%s856_s21 + $0xc8] sm:$0xff] }
  0x18   : > { %756 = vmatmul.mubr.msk.f32.vlgmr.msra.gmra.mxu1 %vm183_vm1, %v171_v20  ;;  %768 = vmatprep.subr.msk.mxu0 %vm196_vm0, %v767_v21  ;;  %v760_v38 = vld [vmem:[%s856_s21 + $0x80] sm:$0xff]  ;;  %v631_v41 = vld [vmem:[%s965_s2 + $0x18] sm:$0xff] }
  0x19   : > { %782 = vmatprep.subr.msk.mxu1 %vm196_vm0, %v781_v22  ;;  %769 = vmatpush1.msk.msra.mxu0 %vm196_vm0, %v766_v23  ;;  %v774_v39 = vld [vmem:[%s856_s21 + $0xc0] sm:$0xff] }
  0x1a   : > { %273 = vmatprep.mubr.f32.mxu0 %v812_v0  ;;  %377 = vmatprep.mubr.f32.mxu1 %v812_v0 }
  0x1b   : > { %783 = vmatpush1.msk.msra.mxu1 %vm196_vm0, %v780_v24  ;;  %743 = vmatmul.mubr.msk.f32.gmra.mxu0 %vm183_vm1, %v172_v25 }
  0x1c   : > { %757 = vmatmul.mubr.msk.f32.gmra.mxu1 %vm183_vm1, %v172_v25  ;;  %445 = vmatprep.subr.mxu0 %v765_v26 }
  0x1d   : > { %557 = vmatprep.subr.mxu1 %v779_v27  ;;  %446 = vmatpush1.msra.mxu0 %v764_v28 }
  0x1e   : > { %279 = vmatprep.mubr.f32.mxu0 %v812_v0  ;;  %383 = vmatprep.mubr.f32.mxu1 %v812_v0 }
  0x1f   : > { %558 = vmatpush1.msra.mxu1 %v778_v29  ;;  %744 = vmatmul.mubr.msk.f32.gmra.mxu0 %vm183_vm1, %v173_v30 }
  0x20   : > { %758 = vmatmul.mubr.msk.f32.gmra.mxu1 %vm183_vm1, %v173_v30  ;;  %447 = vmatprep.subr.mxu0 %v763_v31 }
  0x21   : > { %559 = vmatprep.subr.mxu1 %v777_v32  ;;  %448 = vmatpush1.msra.mxu0 %v762_v33 }
  0x22   : > { %285 = vmatprep.mubr.f32.mxu0 %v812_v0  ;;  %389 = vmatprep.mubr.f32.mxu1 %v812_v0 }
  0x23   : > { %560 = vmatpush1.msra.mxu1 %v776_v34  ;;  %745 = vmatmul.mubr.msk.f32.gmra.mxu0 %vm183_vm1, %v174_v35 }
  0x24   : > { %759 = vmatmul.mubr.msk.f32.gmra.mxu1 %vm183_vm1, %v174_v35  ;;  %449 = vmatprep.subr.mxu0 %v761_v36 }
  0x25   : > { %561 = vmatprep.subr.mxu1 %v775_v37  ;;  %450 = vmatpush1.msra.mxu0 %v760_v38 }
  0x26   : > { %483 = vmatprep.mubr.f32.mxu0 %v812_v0  ;;  %562 = vmatpush1.msra.mxu1 %v774_v39 }
  0x27   : > { %595 = vmatprep.mubr.f32.mxu1 %v812_v0  ;;  %770 = vmatmul.mubr.msk.f32.vlgmr.msra.gmra.mxu0 %vm183_vm1, %v171_v20 }
  0x28   : > { %784 = vmatmul.mubr.msk.f32.vlgmr.msra.gmra.mxu1 %vm183_vm1, %v171_v20  ;;  %489 = vmatprep.mubr.f32.mxu0 %v812_v0 }
  0x29   : > { %601 = vmatprep.mubr.f32.mxu1 %v812_v0  ;;  %639 = vperm.xlu0 %802, %v629_v40  }
  0x2a   : > { %649 = vperm.xlu1 %803, %v631_v41  }
  0x2b   : > { %771 = vmatmul.mubr.msk.f32.gmra.mxu0 %vm183_vm1, %v172_v25 }
  0x2c   : > { %785 = vmatmul.mubr.msk.f32.gmra.mxu1 %vm183_vm1, %v172_v25  ;;  %495 = vmatprep.mubr.f32.mxu0 %v812_v0 }
  0x2d   : > { %607 = vmatprep.mubr.f32.mxu1 %v812_v0 }
  0x2f   : > { %772 = vmatmul.mubr.msk.f32.gmra.mxu0 %vm183_vm1, %v173_v30 }
  0x30   : > { %786 = vmatmul.mubr.msk.f32.gmra.mxu1 %vm183_vm1, %v173_v30  ;;  %501 = vmatprep.mubr.f32.mxu0 %v812_v0 }
  0x31   : > { %613 = vmatprep.mubr.f32.mxu1 %v812_v0 }
  0x33   : > { %773 = vmatmul.mubr.msk.f32.gmra.mxu0 %vm183_vm1, %v174_v35 }
  0x34   : > { %787 = vmatmul.mubr.msk.f32.gmra.mxu1 %vm183_vm1, %v174_v35 }
  0x89   : > { %v635_v59 = vpop.permute.xlu0 %634  ;;  %v645_v26 = vpop.permute.xlu1 %644 }
  0xa4   : > { %v640_v11 = vpop.permute.xlu0 %639 }
  0xd7   : > { %v269_v42 = vpop.f32.mrf.mxu0 }
  0xd8   : > { %v373_v43 = vpop.f32.mrf.mxu1 }
  0xd9   : > { %v271_v44 = vpop.f32.mrf.mxu0  ;;  %v396_v58 = vmax.f32 %v269_v42, %v373_v43 }
  0xda   : > { %v375_v45 = vpop.f32.mrf.mxu1 }
  0xdb   : > { %v275_v46 = vpop.f32.mrf.mxu0  ;;  %v397_v62 = vmax.f32 %v271_v44, %v375_v45 }
  0xdc   : > { %v379_v47 = vpop.f32.mrf.mxu1 }
  0xdd   : > { %v277_v48 = vpop.f32.mrf.mxu0  ;;  %v398_v2 = vmax.f32 %v275_v46, %v379_v47  ;;  %v650_v46 = vpop.permute.xlu1 %649 }
  0xde   : > { %v381_v49 = vpop.f32.mrf.mxu1 }
  0xdf   : > { %v281_v50 = vpop.f32.mrf.mxu0  ;;  %v399_v7 = vmax.f32 %v277_v48, %v381_v49 }
  0xe0   : > { %v385_v51 = vpop.f32.mrf.mxu1 }
  0xe1   : > { %v283_v52 = vpop.f32.mrf.mxu0  ;;  %v400_v12 = vmax.f32 %v281_v50, %v385_v51 }
  0xe2   : > { %v387_v53 = vpop.f32.mrf.mxu1 }
  0xe3   : > { %v287_v54 = vpop.f32.mrf.mxu0  ;;  %v401_v19 = vmax.f32 %v283_v52, %v387_v53 }
  0xe4   : > { %v391_v55 = vpop.f32.mrf.mxu1 }
  0xe5   : > { %v289_v56 = vpop.f32.mrf.mxu0  ;;  %v402_v27 = vmax.f32 %v287_v54, %v391_v55 }
  0xe6   : > { %v393_v57 = vpop.f32.mrf.mxu1 }
  0xe7   : > { %v485_v60 = vpop.f32.mrf.mxu0  ;;  %v403_v34 = vmax.f32 %v289_v56, %v393_v57 }
  0xe8   : > { %v597_v61 = vpop.f32.mrf.mxu1  ;;  %v508_v63 = vmax.f32 %v396_v58, %v485_v60 }
  0xe9   : > { %v487_v0 = vpop.f32.mrf.mxu0 }
  0xea   : > { %v599_v1 = vpop.f32.mrf.mxu1  ;;  %v620_v3 = vmax.f32 %v508_v63, %v597_v61  ;;  %v509_v4 = vmax.f32 %v397_v62, %v487_v0 }
  0xeb   : > { %v491_v5 = vpop.f32.mrf.mxu0 }
  0xec   : > { %v603_v6 = vpop.f32.mrf.mxu1  ;;  %v621_v8 = vmax.f32 %v509_v4, %v599_v1  ;;  %v652_v9 = vadd.f32 %v635_v59, %v620_v3  ;;  %v510_v10 = vmax.f32 %v398_v2, %v491_v5 }
  0xed   : > { %v493_v13 = vpop.f32.mrf.mxu0 }
  0xee   : > { %v605_v14 = vpop.f32.mrf.mxu1  ;;  %v653_v15 = vadd.f32 %v635_v59, %v621_v8  ;;  %v660_v16 = vmax.f32 %v652_v9, 0.0  ;;  %v622_v17 = vmax.f32 %v510_v10, %v603_v6  ;;  %v511_v18 = vmax.f32 %v399_v7, %v493_v13 }
  0xef   : > { %v497_v20 = vpop.f32.mrf.mxu0 }
  0xf0   : > { %v609_v21 = vpop.f32.mrf.mxu1  ;;  %v661_v22 = vmax.f32 %v653_v15, 0.0  ;;  %668 = vst [vmem:[%s950_s10] sm:$0xff] %v660_v16  ;;  %v623_v23 = vmax.f32 %v511_v18, %v605_v14  ;;  %v654_v24 = vadd.f32 %v640_v11, %v622_v17  ;;  %v512_v25 = vmax.f32 %v400_v12, %v497_v20 }
  0xf1   : > { %v499_v28 = vpop.f32.mrf.mxu0 }
  0xf2   : > { %v611_v29 = vpop.f32.mrf.mxu1  ;;  %669 = vst [vmem:[%s950_s10 + $0x8] sm:$0xff] %v661_v22  ;;  %v655_v30 = vadd.f32 %v640_v11, %v623_v23  ;;  %v662_v31 = vmax.f32 %v654_v24, 0.0  ;;  %v624_v32 = vmax.f32 %v512_v25, %v609_v21  ;;  %v513_v33 = vmax.f32 %v401_v19, %v499_v28 }
  0xf3   : > { %v503_v35 = vpop.f32.mrf.mxu0 }
  0xf4   : > { %v615_v36 = vpop.f32.mrf.mxu1  ;;  %v663_v37 = vmax.f32 %v655_v30, 0.0  ;;  %670 = vst [vmem:[%s950_s10 + $0x10] sm:$0xff] %v662_v31  ;;  %v656_v38 = vadd.f32 %v645_v26, %v624_v32  ;;  %v625_v39 = vmax.f32 %v513_v33, %v611_v29  ;;  %v514_v40 = vmax.f32 %v402_v27, %v503_v35 }
  0xf5   : > { %v505_v41 = vpop.f32.mrf.mxu0 }
  0xf6   : > { %671 = vst [vmem:[%s950_s10 + $0x18] sm:$0xff] %v663_v37  ;;  %v664_v42 = vmax.f32 %v656_v38, 0.0  ;;  %v657_v43 = vadd.f32 %v645_v26, %v625_v39  ;;  %v626_v44 = vmax.f32 %v514_v40, %v615_v36  ;;  %v515_v45 = vmax.f32 %v403_v34, %v505_v41  ;;  %v617_v47 = vpop.f32.mrf.mxu1 }
  0xf8   : > { %672 = vst [vmem:[%s950_s10 + $0x20] sm:$0xff] %v664_v42  ;;  %v665_v48 = vmax.f32 %v657_v43, 0.0  ;;  %v658_v49 = vadd.f32 %v650_v46, %v626_v44  ;;  %v627_v50 = vmax.f32 %v515_v45, %v617_v47 }
  0xfa   : > { %673 = vst [vmem:[%s950_s10 + $0x28] sm:$0xff] %v665_v48  ;;  %v666_v51 = vmax.f32 %v658_v49, 0.0  ;;  %v659_v52 = vadd.f32 %v650_v46, %v627_v50 }
  0xfc   : > { %674 = vst [vmem:[%s950_s10 + $0x30] sm:$0xff] %v666_v51  ;;  %v667_v53 = vmax.f32 %v659_v52, 0.0 }
  0xfe   : > { %675 = vst [vmem:[%s950_s10 + $0x38] sm:$0xff] %v667_v53 }
  0xff PF: > { %s13_s12 = sadd.s32 1, %s810_s12  }
 0x100   : > { %p10_p4 = scmp.ge.s32.totalorder %s13_s12, 4  }
 0x102   :  { %12 = sbr.rel (!%p10_p4) target bundleno = 1 (0x1), region = 65 }

</bundles_post_ra>
